<compile_context>
chip_gen: v5e
topology: v5e:2x2
jax: 0.10.0
libtpu: 0.0.40
codegen_flags: <defaults>
</compile_context>

<pallas_src>
import math

import jax
import jax.numpy as jnp
from jax import lax
from jax.experimental import pallas as pl
from jax.experimental.pallas import tpu as pltpu

MARGIN = 0.1  # the module hardcodes self.margin = 0.1 regardless of the ctor arg


def _make_kernel(n, tm, n_pad, last_tile, last_row):
    """n: real sample count; tm: row tile; n_pad: padded N; last_tile/last_row locate anchor n-1."""

    def kernel(x_ref, tcol_ref, trow_ref, out_ref):
        i = pl.program_id(0)

        # --- hot path: (TM, N_pad) similarity strip on the MXU --------------------------------
        start = pl.multiple_of(i * tm, tm)
        x_tile = x_ref[pl.ds(start, tm), :]                       # (TM, D) slice of resident X
        sim = lax.dot_general(
            x_tile, x_ref[...],
            dimension_numbers=(((1,), (1,)), ((), ())),           # contract feature axes: X @ X.T
            preferred_element_type=jnp.float32)                   # (TM, N_pad) f32

        # --- masks (VPU); padding handled with iota validity masks ----------------------------
        same = tcol_ref[...] == trow_ref[...]                     # (TM,1)==(1,N_pad) -> (TM,N_pad)
        col_valid = lax.broadcasted_iota(jnp.int32, (1, n_pad), 1) < n          # real columns
        row_valid = (i * tm + lax.broadcasted_iota(jnp.int32, (tm, 1), 0)) < n  # real anchors

        pos_mask = same & (sim < 1.0) & col_valid                 # unfiltered pos_pair_ membership
        neg_mask = jnp.logical_not(same) & col_valid              # unfiltered neg_pair_ membership

        # sorted pos_pair_[0] == masked row-min ; sorted neg_pair_[-1] == masked row-max
        pos_min = jnp.min(jnp.where(pos_mask, sim, 1e30), axis=1, keepdims=True)   # (TM,1)
        neg_max = jnp.max(jnp.where(neg_mask, sim, -1e30), axis=1, keepdims=True)  # (TM,1)

        neg_keep = neg_mask & (sim > pos_min - MARGIN)
        pos_keep = pos_mask & (sim < neg_max + MARGIN)

        pos_cnt = jnp.sum(jnp.where(pos_keep, 1.0, 0.0), axis=1, keepdims=True)
        neg_cnt = jnp.sum(jnp.where(neg_keep, 1.0, 0.0), axis=1, keepdims=True)
        pos_sum = jnp.sum(jnp.where(pos_keep, sim, 0.0), axis=1, keepdims=True)
        neg_sum = jnp.sum(jnp.where(neg_keep, sim, 0.0), axis=1, keepdims=True)

        has_neg = neg_cnt >= 1.0                                  # len(neg_pair) >= 1
        # guarded reciprocals (EUP); pos_cnt==0 with has_neg is a torch-crash case, guarded to 0
        inv_pos = pl.reciprocal(jnp.maximum(pos_cnt, 1.0), approx=True)
        inv_neg = pl.reciprocal(jnp.maximum(neg_cnt, 1.0), approx=True)
        per_anchor = (1.0 - pos_sum * inv_pos) + neg_sum * inv_neg
        contrib = jnp.where(has_neg & row_valid, per_anchor, 0.0)                # skipped add 0
        skipped = jnp.where(jnp.logical_not(has_neg) & row_valid, 1.0, 0.0)

        loss_part = jnp.sum(contrib)
        skip_part = jnp.sum(skipped)

        # --- lane-dense per-tile partials: lanes [loss, skips, ps, pc, ns, nc, 0...] ----------
        lane = lax.broadcasted_iota(jnp.int32, (1, 128), 1)
        base = (jnp.where(lane == 0, loss_part, 0.0) +
                jnp.where(lane == 1, skip_part, 0.0))
        out_ref[...] = base.reshape(1, 1, 128)

        # --- last-anchor epilogue: only the tile that owns global row n-1 ---------------------
        @pl.when(i == last_tile)
        def _():
            sim_l = sim[last_row:last_row + 1, :]                 # (1, N_pad)
            pm = pos_mask[last_row:last_row + 1, :]
            nm = neg_mask[last_row:last_row + 1, :]
            ps = jnp.sum(jnp.where(pm, sim_l, 0.0))
            pc = jnp.sum(jnp.where(pm, 1.0, 0.0))
            ns = jnp.sum(jnp.where(nm, sim_l, 0.0))
            nc = jnp.sum(jnp.where(nm, 1.0, 0.0))
            stats = (jnp.where(lane == 2, ps, 0.0) + jnp.where(lane == 3, pc, 0.0) +
                     jnp.where(lane == 4, ns, 0.0) + jnp.where(lane == 5, nc, 0.0))
            out_ref[...] = (base + stats).reshape(1, 1, 128)

    return kernel


def hard_mining_loss(inputs, targets):
    """inputs: (N, D) float embeddings; targets: (N,) int labels.
    Returns (loss, prec, mean_pos_sim, mean_neg_sim) as f32 scalars."""
    inputs = inputs.astype(jnp.float32)
    targets = targets.astype(jnp.int32)
    n, d = inputs.shape

    # row-tile size: 128 for tiny batches (also the v5e-friendly choice), 256 otherwise
    tm = 128 if n <= 128 else 256
    n_pad = math.ceil(n / tm) * tm              # multiple of tm and of the 128-lane width
    num_tiles = n_pad // tm
    last_tile = (n - 1) // tm
    last_row = (n - 1) % tm

    if n_pad != n:
        x = jnp.pad(inputs, ((0, n_pad - n), (0, 0)))
        t = jnp.pad(targets, (0, n_pad - n), constant_values=-1)
    else:
        x, t = inputs, targets
    tcol = t.reshape(n_pad, 1)                  # per-anchor labels, tiled as (TM, 1) blocks
    trow = t.reshape(1, n_pad)                  # lane-dense label row, resident

    kernel = _make_kernel(n, tm, n_pad, last_tile, last_row)

    # VMEM budget: resident X + label row, double-buffered label-column tile, (TM,N) strip + temps.
    est = n_pad * d * 4 + 8 * n_pad * 4 + 2 * tm * 128 * 4 + 10 * tm * n_pad * 4
    vmem_limit = int(min(max(est, 32 * 1024 * 1024), 48 * 1024 * 1024))  # <= v7x 64 MiB physical

    out = pl.pallas_call(
        kernel,
        out_shape=jax.ShapeDtypeStruct((num_tiles, 1, 128), jnp.float32),
        grid_spec=pltpu.PrefetchScalarGridSpec(
            num_scalar_prefetch=0,
            grid=(num_tiles,),
            in_specs=[
                pl.BlockSpec((n_pad, d), lambda i: (0, 0)),   # X resident (LHS tiles sliced in-kernel, also RHS)
                pl.BlockSpec((tm, 1), lambda i: (i, 0)),      # labels column, tiled per row tile
                pl.BlockSpec((1, n_pad), lambda i: (0, 0)),   # labels row, resident
            ],
            out_specs=pl.BlockSpec((1, 1, 128), lambda i: (i, 0, 0)),
        ),
        compiler_params=pltpu.CompilerParams(
            dimension_semantics=("parallel",),
            vmem_limit_bytes=vmem_limit),
        cost_estimate=pl.CostEstimate(
            flops=2 * n_pad * n_pad * d,
            transcendentals=2 * n_pad,
            bytes_accessed=n_pad * d * 4 + 2 * n_pad * 4 + num_tiles * 128 * 4),
    )(x, tcol, trow)

    parts = jnp.sum(out.reshape(num_tiles, 128), axis=0)
    nf = jnp.float32(n)
    loss = parts[0] / nf
    prec = parts[1] / nf
    # last anchor's unfiltered means; guarded (torch would NaN/error on empty pos/neg sets)
    mean_pos_sim = jnp.where(parts[3] > 0, parts[2] / jnp.maximum(parts[3], 1.0), 0.0)
    mean_neg_sim = jnp.where(parts[5] > 0, parts[4] / jnp.maximum(parts[5], 1.0), 0.0)
    return loss, prec, mean_pos_sim, mean_neg_sim


if __name__ == "__main__":
    key = jax.random.PRNGKey(0)
    n, d = 8, 32  # small batch of embeddings; every label appears twice
    x = jax.random.normal(key, (n, d), dtype=jnp.float32)
    # scale to norm 0.8 so self-similarity (0.64) is safely away from the `< 1` threshold
    x = 0.8 * x / jnp.linalg.norm(x, axis=1, keepdims=True)
    targets = jnp.array([0, 1, 2, 3, 0, 1, 2, 3], dtype=jnp.int32)

    loss, prec, mean_pos_sim, mean_neg_sim = hard_mining_loss(x, targets)
    jax.block_until_ready((loss, prec, mean_pos_sim, mean_neg_sim))
    print("KERNEL_OK")
</pallas_src>

<mosaic_0001>
module attributes {stable_mosaic.version = 11 : i64} {
  func.func @kernel(%arg0: i32, %arg1: memref<128x32xf32, #tpu.memory_space<vmem>>, %arg2: memref<128x1xi32, #tpu.memory_space<vmem>>, %arg3: memref<1x128xi32, #tpu.memory_space<vmem>>, %arg4: memref<1x1x128xf32, #tpu.memory_space<vmem>>) attributes {dimension_semantics = [#tpu.dimension_semantics<parallel>], iteration_bounds = array<i64: 1>, scalar_prefetch = 0 : i64, scratch_operands = 0 : i64, tpu.core_type = #tpu.core_type<tc>, window_params = [{pipeline_mode = #tpu.pipeline_mode<synchronous>, transform_indices = @transform_0, window_bounds = array<i64: 128, 32>}, {transform_indices = @transform_1, window_bounds = array<i64: 128, 1>}, {pipeline_mode = #tpu.pipeline_mode<synchronous>, transform_indices = @transform_2, window_bounds = array<i64: 1, 128>}, {transform_indices = @transform_3, window_bounds = array<i64: 1, 1, 128>}]} {
    %c128_i32 = arith.constant 128 : i32
    %0 = arith.muli %arg0, %c128_i32 : i32
    %1 = tpu.assume_multiple %0, 128 : i32
    %2 = arith.index_cast %1 : i32 to index
    %c0 = arith.constant 0 : index
    %3 = vector.load %arg1[%2, %c0] : memref<128x32xf32, #tpu.memory_space<vmem>>, vector<128x32xf32>
    %c0_0 = arith.constant 0 : index
    %c0_1 = arith.constant 0 : index
    %4 = vector.load %arg1[%c0_0, %c0_1] : memref<128x32xf32, #tpu.memory_space<vmem>>, vector<128x32xf32>
    %cst = arith.constant dense<0.000000e+00> : vector<128x128xf32>
    %5 = tpu.matmul %3, %4, %cst {dimension_numbers = #tpu.dot_dimension_numbers<[1], [1], [0], [0], [0, 0, 1, 0], [], []>} : vector<128x32xf32>, vector<128x32xf32>, vector<128x128xf32> -> vector<128x128xf32>
    %c0_2 = arith.constant 0 : index
    %c0_3 = arith.constant 0 : index
    %6 = vector.load %arg2[%c0_2, %c0_3] : memref<128x1xi32, #tpu.memory_space<vmem>>, vector<128x1xi32>
    %c0_4 = arith.constant 0 : index
    %c0_5 = arith.constant 0 : index
    %7 = vector.load %arg3[%c0_4, %c0_5] : memref<1x128xi32, #tpu.memory_space<vmem>>, vector<1x128xi32>
    %8 = vector.broadcast %6 : vector<128x1xi32> to vector<128x128xi32>
    %9 = vector.broadcast %7 : vector<1x128xi32> to vector<128x128xi32>
    %10 = arith.cmpi eq, %8, %9 : vector<128x128xi32>
    %11 = tpu.iota {dimensions = array<i32: 1>} : vector<1x128xi32>
    %c8_i32 = arith.constant 8 : i32
    %12 = vector.broadcast %c8_i32 : i32 to vector<1x128xi32>
    %13 = arith.cmpi slt, %11, %12 : vector<1x128xi32>
    %c128_i32_6 = arith.constant 128 : i32
    %14 = arith.muli %arg0, %c128_i32_6 : i32
    %15 = tpu.iota {dimensions = array<i32: 0>} : vector<128x1xi32>
    %16 = vector.broadcast %14 : i32 to vector<128x1xi32>
    %17 = arith.addi %16, %15 : vector<128x1xi32>
    %c8_i32_7 = arith.constant 8 : i32
    %18 = vector.broadcast %c8_i32_7 : i32 to vector<128x1xi32>
    %19 = arith.cmpi slt, %17, %18 : vector<128x1xi32>
    %cst_8 = arith.constant 1.000000e+00 : f32
    %20 = vector.broadcast %cst_8 : f32 to vector<128x128xf32>
    %21 = arith.cmpf olt, %5, %20 : vector<128x128xf32>
    %22 = arith.andi %10, %21 : vector<128x128xi1>
    %23 = vector.broadcast %13 : vector<1x128xi1> to vector<128x128xi1>
    %24 = arith.andi %22, %23 : vector<128x128xi1>
    %cst_9 = arith.constant dense<true> : vector<128x128xi1>
    %25 = arith.xori %10, %cst_9 : vector<128x128xi1>
    %26 = vector.broadcast %13 : vector<1x128xi1> to vector<128x128xi1>
    %27 = arith.andi %25, %26 : vector<128x128xi1>
    %cst_10 = arith.constant 1.000000e+30 : f32
    %28 = vector.broadcast %cst_10 : f32 to vector<128x128xf32>
    %29 = arith.select %24, %5, %28 : vector<128x128xi1>, vector<128x128xf32>
    %cst_11 = arith.constant dense<0x7F800000> : vector<128xf32>
    %30 = vector.multi_reduction <minimumf>, %29, %cst_11 [1] : vector<128x128xf32> to vector<128xf32>
    %31 = vector.shape_cast %30 : vector<128xf32> to vector<128x1xf32>
    %cst_12 = arith.constant -1.000000e+30 : f32
    %32 = vector.broadcast %cst_12 : f32 to vector<128x128xf32>
    %33 = arith.select %27, %5, %32 : vector<128x128xi1>, vector<128x128xf32>
    %cst_13 = arith.constant dense<0xFF800000> : vector<128xf32>
    %34 = vector.multi_reduction <maximumf>, %33, %cst_13 [1] : vector<128x128xf32> to vector<128xf32>
    %35 = vector.shape_cast %34 : vector<128xf32> to vector<128x1xf32>
    %cst_14 = arith.constant 1.000000e-01 : f32
    %36 = vector.broadcast %cst_14 : f32 to vector<128x1xf32>
    %37 = arith.subf %31, %36 : vector<128x1xf32>
    %38 = vector.broadcast %37 : vector<128x1xf32> to vector<128x128xf32>
    %39 = arith.cmpf ogt, %5, %38 : vector<128x128xf32>
    %40 = arith.andi %27, %39 : vector<128x128xi1>
    %cst_15 = arith.constant 1.000000e-01 : f32
    %41 = vector.broadcast %cst_15 : f32 to vector<128x1xf32>
    %42 = arith.addf %35, %41 : vector<128x1xf32>
    %43 = vector.broadcast %42 : vector<128x1xf32> to vector<128x128xf32>
    %44 = arith.cmpf olt, %5, %43 : vector<128x128xf32>
    %45 = arith.andi %24, %44 : vector<128x128xi1>
    %cst_16 = arith.constant 1.000000e+00 : f32
    %cst_17 = arith.constant 0.000000e+00 : f32
    %46 = vector.broadcast %cst_16 : f32 to vector<128x128xf32>
    %47 = vector.broadcast %cst_17 : f32 to vector<128x128xf32>
    %48 = arith.select %45, %46, %47 : vector<128x128xi1>, vector<128x128xf32>
    %cst_18 = arith.constant dense<0.000000e+00> : vector<128xf32>
    %49 = vector.multi_reduction <add>, %48, %cst_18 [1] : vector<128x128xf32> to vector<128xf32>
    %50 = vector.shape_cast %49 : vector<128xf32> to vector<128x1xf32>
    %cst_19 = arith.constant 1.000000e+00 : f32
    %cst_20 = arith.constant 0.000000e+00 : f32
    %51 = vector.broadcast %cst_19 : f32 to vector<128x128xf32>
    %52 = vector.broadcast %cst_20 : f32 to vector<128x128xf32>
    %53 = arith.select %40, %51, %52 : vector<128x128xi1>, vector<128x128xf32>
    %cst_21 = arith.constant dense<0.000000e+00> : vector<128xf32>
    %54 = vector.multi_reduction <add>, %53, %cst_21 [1] : vector<128x128xf32> to vector<128xf32>
    %55 = vector.shape_cast %54 : vector<128xf32> to vector<128x1xf32>
    %cst_22 = arith.constant 0.000000e+00 : f32
    %56 = vector.broadcast %cst_22 : f32 to vector<128x128xf32>
    %57 = arith.select %45, %5, %56 : vector<128x128xi1>, vector<128x128xf32>
    %cst_23 = arith.constant dense<0.000000e+00> : vector<128xf32>
    %58 = vector.multi_reduction <add>, %57, %cst_23 [1] : vector<128x128xf32> to vector<128xf32>
    %59 = vector.shape_cast %58 : vector<128xf32> to vector<128x1xf32>
    %cst_24 = arith.constant 0.000000e+00 : f32
    %60 = vector.broadcast %cst_24 : f32 to vector<128x128xf32>
    %61 = arith.select %40, %5, %60 : vector<128x128xi1>, vector<128x128xf32>
    %cst_25 = arith.constant dense<0.000000e+00> : vector<128xf32>
    %62 = vector.multi_reduction <add>, %61, %cst_25 [1] : vector<128x128xf32> to vector<128xf32>
    %63 = vector.shape_cast %62 : vector<128xf32> to vector<128x1xf32>
    %cst_26 = arith.constant 1.000000e+00 : f32
    %64 = vector.broadcast %cst_26 : f32 to vector<128x1xf32>
    %65 = arith.cmpf oge, %55, %64 : vector<128x1xf32>
    %cst_27 = arith.constant 1.000000e+00 : f32
    %66 = vector.broadcast %cst_27 : f32 to vector<128x1xf32>
    %67 = arith.maximumf %50, %66 : vector<128x1xf32>
    %68 = tpu.reciprocal %67 {approx = true} : vector<128x1xf32> -> vector<128x1xf32>
    %cst_28 = arith.constant 1.000000e+00 : f32
    %69 = vector.broadcast %cst_28 : f32 to vector<128x1xf32>
    %70 = arith.maximumf %55, %69 : vector<128x1xf32>
    %71 = tpu.reciprocal %70 {approx = true} : vector<128x1xf32> -> vector<128x1xf32>
    %72 = arith.mulf %59, %68 : vector<128x1xf32>
    %cst_29 = arith.constant 1.000000e+00 : f32
    %73 = vector.broadcast %cst_29 : f32 to vector<128x1xf32>
    %74 = arith.subf %73, %72 : vector<128x1xf32>
    %75 = arith.mulf %63, %71 : vector<128x1xf32>
    %76 = arith.addf %74, %75 : vector<128x1xf32>
    %77 = arith.andi %65, %19 : vector<128x1xi1>
    %cst_30 = arith.constant 0.000000e+00 : f32
    %78 = vector.broadcast %cst_30 : f32 to vector<128x1xf32>
    %79 = arith.select %77, %76, %78 : vector<128x1xi1>, vector<128x1xf32>
    %cst_31 = arith.constant dense<true> : vector<128x1xi1>
    %80 = arith.xori %65, %cst_31 : vector<128x1xi1>
    %81 = arith.andi %80, %19 : vector<128x1xi1>
    %cst_32 = arith.constant 1.000000e+00 : f32
    %cst_33 = arith.constant 0.000000e+00 : f32
    %82 = vector.broadcast %cst_32 : f32 to vector<128x1xf32>
    %83 = vector.broadcast %cst_33 : f32 to vector<128x1xf32>
    %84 = arith.select %81, %82, %83 : vector<128x1xi1>, vector<128x1xf32>
    %85 = vector.shape_cast %79 : vector<128x1xf32> to vector<1x128x1xf32>
    %cst_34 = arith.constant dense<0.000000e+00> : vector<1xf32>
    %86 = vector.multi_reduction <add>, %85, %cst_34 [1, 2] : vector<1x128x1xf32> to vector<1xf32>
    %87 = vector.shape_cast %86 : vector<1xf32> to vector<1x1x1xf32>
    %88 = vector.extract %87[0, 0, 0] : f32 from vector<1x1x1xf32>
    %89 = vector.shape_cast %84 : vector<128x1xf32> to vector<1x128x1xf32>
    %cst_35 = arith.constant dense<0.000000e+00> : vector<1xf32>
    %90 = vector.multi_reduction <add>, %89, %cst_35 [1, 2] : vector<1x128x1xf32> to vector<1xf32>
    %91 = vector.shape_cast %90 : vector<1xf32> to vector<1x1x1xf32>
    %92 = vector.extract %91[0, 0, 0] : f32 from vector<1x1x1xf32>
    %93 = tpu.iota {dimensions = array<i32: 1>} : vector<1x128xi32>
    %c0_i32 = arith.constant 0 : i32
    %94 = vector.broadcast %c0_i32 : i32 to vector<1x128xi32>
    %95 = arith.cmpi eq, %93, %94 : vector<1x128xi32>
    %cst_36 = arith.constant 0.000000e+00 : f32
    %96 = vector.broadcast %88 : f32 to vector<1x128xf32>
    %97 = vector.broadcast %cst_36 : f32 to vector<1x128xf32>
    %98 = arith.select %95, %96, %97 : vector<1x128xi1>, vector<1x128xf32>
    %c1_i32 = arith.constant 1 : i32
    %99 = vector.broadcast %c1_i32 : i32 to vector<1x128xi32>
    %100 = arith.cmpi eq, %93, %99 : vector<1x128xi32>
    %cst_37 = arith.constant 0.000000e+00 : f32
    %101 = vector.broadcast %92 : f32 to vector<1x128xf32>
    %102 = vector.broadcast %cst_37 : f32 to vector<1x128xf32>
    %103 = arith.select %100, %101, %102 : vector<1x128xi1>, vector<1x128xf32>
    %104 = arith.addf %98, %103 : vector<1x128xf32>
    %105 = vector.shape_cast %104 : vector<1x128xf32> to vector<1x1x128xf32>
    %c0_38 = arith.constant 0 : index
    %c0_39 = arith.constant 0 : index
    %c0_40 = arith.constant 0 : index
    %106 = vector.load %arg4[%c0_38, %c0_39, %c0_40] : memref<1x1x128xf32, #tpu.memory_space<vmem>>, vector<1x1x128xf32>
    tpu.vector_store %arg4[%c0_38, %c0_39, %c0_40], %105 {strides = array<i32>} : memref<1x1x128xf32, #tpu.memory_space<vmem>>, vector<1x1x128xf32>,
    %c0_i32_41 = arith.constant 0 : i32
    %107 = arith.cmpi eq, %arg0, %c0_i32_41 : i32
    %108 = arith.extui %107 : i1 to i32
    %c0_i32_42 = arith.constant 0 : i32
    %109 = arith.cmpi ne, %108, %c0_i32_42 : i32
    scf.if %109 {
      %110 = vector.extract_strided_slice %5 {offsets = [7, 0], sizes = [1, 128], strides = [1, 1]} : vector<128x128xf32> to vector<1x128xf32>
      %111 = vector.extract_strided_slice %24 {offsets = [7, 0], sizes = [1, 128], strides = [1, 1]} : vector<128x128xi1> to vector<1x128xi1>
      %112 = vector.extract_strided_slice %27 {offsets = [7, 0], sizes = [1, 128], strides = [1, 1]} : vector<128x128xi1> to vector<1x128xi1>
      %cst_43 = arith.constant 0.000000e+00 : f32
      %113 = vector.broadcast %cst_43 : f32 to vector<1x128xf32>
      %114 = arith.select %111, %110, %113 : vector<1x128xi1>, vector<1x128xf32>
      %115 = vector.shape_cast %114 : vector<1x128xf32> to vector<1x1x128xf32>
      %cst_44 = arith.constant dense<0.000000e+00> : vector<1xf32>
      %116 = vector.multi_reduction <add>, %115, %cst_44 [1, 2] : vector<1x1x128xf32> to vector<1xf32>
      %117 = vector.shape_cast %116 : vector<1xf32> to vector<1x1x1xf32>
      %118 = vector.extract %117[0, 0, 0] : f32 from vector<1x1x1xf32>
      %cst_45 = arith.constant 1.000000e+00 : f32
      %cst_46 = arith.constant 0.000000e+00 : f32
      %119 = vector.broadcast %cst_45 : f32 to vector<1x128xf32>
      %120 = vector.broadcast %cst_46 : f32 to vector<1x128xf32>
      %121 = arith.select %111, %119, %120 : vector<1x128xi1>, vector<1x128xf32>
      %122 = vector.shape_cast %121 : vector<1x128xf32> to vector<1x1x128xf32>
      %cst_47 = arith.constant dense<0.000000e+00> : vector<1xf32>
      %123 = vector.multi_reduction <add>, %122, %cst_47 [1, 2] : vector<1x1x128xf32> to vector<1xf32>
      %124 = vector.shape_cast %123 : vector<1xf32> to vector<1x1x1xf32>
      %125 = vector.extract %124[0, 0, 0] : f32 from vector<1x1x1xf32>
      %cst_48 = arith.constant 0.000000e+00 : f32
      %126 = vector.broadcast %cst_48 : f32 to vector<1x128xf32>
      %127 = arith.select %112, %110, %126 : vector<1x128xi1>, vector<1x128xf32>
      %128 = vector.shape_cast %127 : vector<1x128xf32> to vector<1x1x128xf32>
      %cst_49 = arith.constant dense<0.000000e+00> : vector<1xf32>
      %129 = vector.multi_reduction <add>, %128, %cst_49 [1, 2] : vector<1x1x128xf32> to vector<1xf32>
      %130 = vector.shape_cast %129 : vector<1xf32> to vector<1x1x1xf32>
      %131 = vector.extract %130[0, 0, 0] : f32 from vector<1x1x1xf32>
      %cst_50 = arith.constant 1.000000e+00 : f32
      %cst_51 = arith.constant 0.000000e+00 : f32
      %132 = vector.broadcast %cst_50 : f32 to vector<1x128xf32>
      %133 = vector.broadcast %cst_51 : f32 to vector<1x128xf32>
      %134 = arith.select %112, %132, %133 : vector<1x128xi1>, vector<1x128xf32>
      %135 = vector.shape_cast %134 : vector<1x128xf32> to vector<1x1x128xf32>
      %cst_52 = arith.constant dense<0.000000e+00> : vector<1xf32>
      %136 = vector.multi_reduction <add>, %135, %cst_52 [1, 2] : vector<1x1x128xf32> to vector<1xf32>
      %137 = vector.shape_cast %136 : vector<1xf32> to vector<1x1x1xf32>
      %138 = vector.extract %137[0, 0, 0] : f32 from vector<1x1x1xf32>
      %c2_i32 = arith.constant 2 : i32
      %139 = vector.broadcast %c2_i32 : i32 to vector<1x128xi32>
      %140 = arith.cmpi eq, %93, %139 : vector<1x128xi32>
      %cst_53 = arith.constant 0.000000e+00 : f32
      %141 = vector.broadcast %118 : f32 to vector<1x128xf32>
      %142 = vector.broadcast %cst_53 : f32 to vector<1x128xf32>
      %143 = arith.select %140, %141, %142 : vector<1x128xi1>, vector<1x128xf32>
      %c3_i32 = arith.constant 3 : i32
      %144 = vector.broadcast %c3_i32 : i32 to vector<1x128xi32>
      %145 = arith.cmpi eq, %93, %144 : vector<1x128xi32>
      %cst_54 = arith.constant 0.000000e+00 : f32
      %146 = vector.broadcast %125 : f32 to vector<1x128xf32>
      %147 = vector.broadcast %cst_54 : f32 to vector<1x128xf32>
      %148 = arith.select %145, %146, %147 : vector<1x128xi1>, vector<1x128xf32>
      %149 = arith.addf %143, %148 : vector<1x128xf32>
      %c4_i32 = arith.constant 4 : i32
      %150 = vector.broadcast %c4_i32 : i32 to vector<1x128xi32>
      %151 = arith.cmpi eq, %93, %150 : vector<1x128xi32>
      %cst_55 = arith.constant 0.000000e+00 : f32
      %152 = vector.broadcast %131 : f32 to vector<1x128xf32>
      %153 = vector.broadcast %cst_55 : f32 to vector<1x128xf32>
      %154 = arith.select %151, %152, %153 : vector<1x128xi1>, vector<1x128xf32>
      %155 = arith.addf %149, %154 : vector<1x128xf32>
      %c5_i32 = arith.constant 5 : i32
      %156 = vector.broadcast %c5_i32 : i32 to vector<1x128xi32>
      %157 = arith.cmpi eq, %93, %156 : vector<1x128xi32>
      %cst_56 = arith.constant 0.000000e+00 : f32
      %158 = vector.broadcast %138 : f32 to vector<1x128xf32>
      %159 = vector.broadcast %cst_56 : f32 to vector<1x128xf32>
      %160 = arith.select %157, %158, %159 : vector<1x128xi1>, vector<1x128xf32>
      %161 = arith.addf %155, %160 : vector<1x128xf32>
      %162 = arith.addf %104, %161 : vector<1x128xf32>
      %163 = vector.shape_cast %162 : vector<1x128xf32> to vector<1x1x128xf32>
      %c0_57 = arith.constant 0 : index
      %c0_58 = arith.constant 0 : index
      %c0_59 = arith.constant 0 : index
      %164 = vector.load %arg4[%c0_57, %c0_58, %c0_59] : memref<1x1x128xf32, #tpu.memory_space<vmem>>, vector<1x1x128xf32>
      tpu.vector_store %arg4[%c0_57, %c0_58, %c0_59], %163 {strides = array<i32>} : memref<1x1x128xf32, #tpu.memory_space<vmem>>, vector<1x1x128xf32>,
    } else {
    }
    return
  }
  func.func @transform_0(%arg0: i32) -> (i32, i32) {
    %c0_i32 = arith.constant 0 : i32
    %c0_i32_0 = arith.constant 0 : i32
    %c0_i32_1 = arith.constant 0 : i32
    return %c0_i32, %c0_i32_0 : i32, i32
  }
  func.func @transform_1(%arg0: i32) -> (i32, i32) {
    %c0_i32 = arith.constant 0 : i32
    %c0_i32_0 = arith.constant 0 : i32
    return %arg0, %c0_i32 : i32, i32
  }
  func.func @transform_2(%arg0: i32) -> (i32, i32) {
    %c0_i32 = arith.constant 0 : i32
    %c0_i32_0 = arith.constant 0 : i32
    %c0_i32_1 = arith.constant 0 : i32
    return %c0_i32, %c0_i32_0 : i32, i32
  }
  func.func @transform_3(%arg0: i32) -> (i32, i32, i32) {
    %c0_i32 = arith.constant 0 : i32
    %c0_i32_0 = arith.constant 0 : i32
    %c0_i32_1 = arith.constant 0 : i32
    return %arg0, %c0_i32, %c0_i32_0 : i32, i32, i32
  }
}

</mosaic_0001>

<bundles_post_ra>
// kernel: tpu_custom_call.1
= control target key start
LH: loop header
LB: loop body
LE: loop exit
PB: predicated region body
PF: predicated region fallthrough
CT: control target
= control target key end

     0   :  { %vm49_vm0 = vcmask 261120   ;;  %s1620_s0 = inlined_call_operand.vmem [shape: f32[128,32], index: 0, kind: input, shape index: {}]   ;;  %s1621_s1 = inlined_call_operand.vmem [shape: s32[128,1], index: 1, kind: input, shape index: {}]   ;;  %s1622_s2 = inlined_call_operand.vmem [shape: s32[1,128], index: 2, kind: input, shape index: {}]   ;;  %s1623_s3 = inlined_call_operand.hbm [shape: f32[1,1,128], index: 3, kind: output, shape index: {}]  }
   0x1   :  { %v1390_v0 = vld [vmem:[%s1620_s0 + $0x78] sm:$0xff]  ;;  %v1399_v1 = vld [vmem:[%s1620_s0 + $0x70] sm:$0xff] }
   0x2   :  { %1219 = vmatpush.xpose.msk.msra.mxu0 %vm49_vm0, %v1390_v0  ;;  %1268 = vmatpush.xpose.msk.msra.mxu2 %vm49_vm0, %v1390_v0 }
   0x3   :  { %1269 = vmatpush.xpose.msk.msra.mxu3 %vm49_vm0, %v1390_v0  ;;  %1267 = vmatpush.xpose.msk.msra.mxu1 %vm49_vm0, %v1390_v0 }
   0x4   :  { %8 = vsyncpa [#allocation3], 0  ;;  %v1412_v2 = vld [vmem:[%s1620_s0 + $0x68] sm:$0xff]  ;;  %v1425_v3 = vld [vmem:[%s1620_s0 + $0x60] sm:$0xff]  ;;  %v1363_v10 = vmov 0   ;;  %v293_v18 = vlaneseq  ;;  %vm1364_vm3 = vmmov 1  }
   0x5   :  { %v1438_v4 = vld [vmem:[%s1620_s0 + $0x58] sm:$0xff]  ;;  %v1451_v5 = vld [vmem:[%s1620_s0 + $0x50] sm:$0xff]  ;;  %v42_v6 = vld [vmem:[%s1620_s0 + $0x48] sm:$0xff]  ;;  %1331 = vset.pattern.permute.xlu0 %v1363_v10  ;;  %v1365_v46 = vmov 0.0   ;;  %vm1133_vm13 = vcmask 1040384   ;;  %vm1036_vm15 = vcmask 7168  }
   0x6   :  { %1220 = vmatpush.xpose.msk.msra.mxu0 %vm49_vm0, %v1399_v1  ;;  %1271 = vmatpush.xpose.msk.msra.mxu2 %vm49_vm0, %v1399_v1  ;;  %v41_v7 = vld [vmem:[%s1620_s0 + $0x40] sm:$0xff]  ;;  %v40_v8 = vld [vmem:[%s1620_s0 + $0x38] sm:$0xff]  ;;  %v39_v11 = vld [vmem:[%s1620_s0 + $0x30] sm:$0xff]  ;;  %v1563_v21 = vand.u32 127, %v293_v18  ;;  %s1366_s24 = smov [#allocation2]   ;;  %s1210_s28 = sshll.u32 %s1623_s3, 4  ;;  %s1211_s28 = int_to_ptr.hbm [resolvable:$true] %s1210_s28 }
   0x7   :  { %1272 = vmatpush.xpose.msk.msra.mxu3 %vm49_vm0, %v1399_v1  ;;  %1270 = vmatpush.xpose.msk.msra.mxu1 %vm49_vm0, %v1399_v1  ;;  %v211_v9 = vld [vmem:[%s1621_s1] sm:$0xff]  ;;  %v38_v12 = vld [vmem:[%s1620_s0 + $0x28] sm:$0xff]  ;;  %v36_v14 = vld [vmem:[%s1620_s0 + $0x18] sm:$0xff]  ;;  %s1208_s25 = sshll.u32 %s1366_s24, 4  ;;  %s1209_s25 = int_to_ptr.vmem [resolvable:$true] %s1208_s25 }
   0x8   :  { %229 = vperm.xlu0 %1331, %v211_v9   ;;  %v37_v13 = vld [vmem:[%s1620_s0 + $0x20] sm:$0xff]  ;;  %v35_v15 = vld [vmem:[%s1620_s0 + $0x10] sm:$0xff]  ;;  %v34_v16 = vld [vmem:[%s1620_s0 + $0x8] sm:$0xff]  ;;  %vm295_vm2 = vcmp.lt.s32.totalorder %v1563_v21, 8 }
   0x9   :  { %v33_v17 = vld [vmem:[%s1620_s0] sm:$0xff] }
   0xa   :  { %1221 = vmatpush.xpose.msk.msra.mxu0 %vm49_vm0, %v1412_v2  ;;  %1274 = vmatpush.xpose.msk.msra.mxu2 %vm49_vm0, %v1412_v2  ;;  %v1332_v19 = vld [vmem:[%s1622_s2] ss:$0 sm:$0xff] }
   0xb   :  { %1275 = vmatpush.xpose.msk.msra.mxu3 %vm49_vm0, %v1412_v2  ;;  %1273 = vmatpush.xpose.msk.msra.mxu1 %vm49_vm0, %v1412_v2 }
   0xe   :  { %1222 = vmatpush.xpose.msk.msra.mxu0 %vm49_vm0, %v1425_v3  ;;  %1277 = vmatpush.xpose.msk.msra.mxu2 %vm49_vm0, %v1425_v3 }
   0xf   :  { %1278 = vmatpush.xpose.msk.msra.mxu3 %vm49_vm0, %v1425_v3  ;;  %1276 = vmatpush.xpose.msk.msra.mxu1 %vm49_vm0, %v1425_v3 }
  0x12   :  { %1223 = vmatpush.xpose.msk.msra.mxu0 %vm49_vm0, %v1438_v4  ;;  %1280 = vmatpush.xpose.msk.msra.mxu2 %vm49_vm0, %v1438_v4 }
  0x13   :  { %1281 = vmatpush.xpose.msk.msra.mxu3 %vm49_vm0, %v1438_v4  ;;  %1279 = vmatpush.xpose.msk.msra.mxu1 %vm49_vm0, %v1438_v4 }
  0x16   :  { %1224 = vmatpush.xpose.msk.msra.mxu0 %vm49_vm0, %v1451_v5  ;;  %1283 = vmatpush.xpose.msk.msra.mxu2 %vm49_vm0, %v1451_v5 }
  0x17   :  { %1284 = vmatpush.xpose.msk.msra.mxu3 %vm49_vm0, %v1451_v5  ;;  %1282 = vmatpush.xpose.msk.msra.mxu1 %vm49_vm0, %v1451_v5 }
  0x1a   :  { %1225 = vmatpush.xpose.msk.msra.mxu0 %vm49_vm0, %v42_v6  ;;  %1286 = vmatpush.xpose.msk.msra.mxu2 %vm49_vm0, %v42_v6 }
  0x1b   :  { %1287 = vmatpush.xpose.msk.msra.mxu3 %vm49_vm0, %v42_v6  ;;  %1285 = vmatpush.xpose.msk.msra.mxu1 %vm49_vm0, %v42_v6 }
  0x1e   :  { %1226 = vmatpush.xpose.msk.msra.mxu0 %vm49_vm0, %v41_v7  ;;  %1289 = vmatpush.xpose.msk.msra.mxu2 %vm49_vm0, %v41_v7 }
  0x1f   :  { %1290 = vmatpush.xpose.msk.msra.mxu3 %vm49_vm0, %v41_v7  ;;  %1288 = vmatpush.xpose.msk.msra.mxu1 %vm49_vm0, %v41_v7 }
  0x22   :  { %1227 = vmatpush.xpose.msk.msra.mxu0 %vm49_vm0, %v40_v8  ;;  %1292 = vmatpush.xpose.msk.msra.mxu2 %vm49_vm0, %v40_v8 }
  0x23   :  { %1293 = vmatpush.xpose.msk.msra.mxu3 %vm49_vm0, %v40_v8  ;;  %1291 = vmatpush.xpose.msk.msra.mxu1 %vm49_vm0, %v40_v8 }
  0x26   :  { %1228 = vmatpush.xpose.msk.msra.mxu0 %vm49_vm0, %v39_v11  ;;  %1295 = vmatpush.xpose.msk.msra.mxu2 %vm49_vm0, %v39_v11 }
  0x27   :  { %1296 = vmatpush.xpose.msk.msra.mxu3 %vm49_vm0, %v39_v11  ;;  %1294 = vmatpush.xpose.msk.msra.mxu1 %vm49_vm0, %v39_v11 }
  0x2a   :  { %1229 = vmatpush.xpose.msk.msra.mxu0 %vm49_vm0, %v38_v12  ;;  %1298 = vmatpush.xpose.msk.msra.mxu2 %vm49_vm0, %v38_v12 }
  0x2b   :  { %1299 = vmatpush.xpose.msk.msra.mxu3 %vm49_vm0, %v38_v12  ;;  %1297 = vmatpush.xpose.msk.msra.mxu1 %vm49_vm0, %v38_v12 }
  0x2e   :  { %1230 = vmatpush.xpose.msk.msra.mxu0 %vm49_vm0, %v37_v13  ;;  %1301 = vmatpush.xpose.msk.msra.mxu2 %vm49_vm0, %v37_v13 }
  0x2f   :  { %1302 = vmatpush.xpose.msk.msra.mxu3 %vm49_vm0, %v37_v13  ;;  %1300 = vmatpush.xpose.msk.msra.mxu1 %vm49_vm0, %v37_v13 }
  0x32   :  { %1231 = vmatpush.xpose.msk.msra.mxu0 %vm49_vm0, %v36_v14  ;;  %1304 = vmatpush.xpose.msk.msra.mxu2 %vm49_vm0, %v36_v14 }
  0x33   :  { %1305 = vmatpush.xpose.msk.msra.mxu3 %vm49_vm0, %v36_v14  ;;  %1303 = vmatpush.xpose.msk.msra.mxu1 %vm49_vm0, %v36_v14 }
  0x36   :  { %1232 = vmatpush.xpose.msk.msra.mxu0 %vm49_vm0, %v35_v15  ;;  %1307 = vmatpush.xpose.msk.msra.mxu2 %vm49_vm0, %v35_v15 }
  0x37   :  { %1308 = vmatpush.xpose.msk.msra.mxu3 %vm49_vm0, %v35_v15  ;;  %1306 = vmatpush.xpose.msk.msra.mxu1 %vm49_vm0, %v35_v15 }
  0x3a   :  { %1233 = vmatpush.xpose.msk.msra.mxu0 %vm49_vm0, %v34_v16  ;;  %1310 = vmatpush.xpose.msk.msra.mxu2 %vm49_vm0, %v34_v16 }
  0x3b   :  { %1311 = vmatpush.xpose.msk.msra.mxu3 %vm49_vm0, %v34_v16  ;;  %1309 = vmatpush.xpose.msk.msra.mxu1 %vm49_vm0, %v34_v16 }
  0x3e   :  { %1234 = vmatpush.xpose.msk.msra.mxu0 %vm49_vm0, %v33_v17  ;;  %1313 = vmatpush.xpose.msk.msra.mxu2 %vm49_vm0, %v33_v17 }
  0x3f   :  { %1314 = vmatpush.xpose.msk.msra.mxu3 %vm49_vm0, %v33_v17  ;;  %1312 = vmatpush.xpose.msk.msra.mxu1 %vm49_vm0, %v33_v17 }
  0x41   :  { %1235 = vmatmul.msk.f32.vlgmr.msra.gmra.mxu0 %vm49_vm0, %v33_v17  ;;  %1243 = vmatmul.msk.f32.vlgmr.msra.gmra.mxu2 %vm49_vm0, %v41_v7 }
  0x42   :  { %1247 = vmatmul.msk.f32.vlgmr.msra.gmra.mxu3 %vm49_vm0, %v1425_v3  ;;  %1239 = vmatmul.msk.f32.vlgmr.msra.gmra.mxu1 %vm49_vm0, %v37_v13 }
  0x49   :  { %1236 = vmatmul.msk.f32.gmra.mxu0 %vm49_vm0, %v34_v16  ;;  %1244 = vmatmul.msk.f32.gmra.mxu2 %vm49_vm0, %v42_v6 }
  0x4a   :  { %1248 = vmatmul.msk.f32.gmra.mxu3 %vm49_vm0, %v1412_v2  ;;  %1240 = vmatmul.msk.f32.gmra.mxu1 %vm49_vm0, %v38_v12 }
  0x51   :  { %1237 = vmatmul.msk.f32.gmra.mxu0 %vm49_vm0, %v35_v15  ;;  %1245 = vmatmul.msk.f32.gmra.mxu2 %vm49_vm0, %v1451_v5 }
  0x52   :  { %1249 = vmatmul.msk.f32.gmra.mxu3 %vm49_vm0, %v1399_v1  ;;  %1241 = vmatmul.msk.f32.gmra.mxu1 %vm49_vm0, %v39_v11 }
  0x59   :  { %1238 = vmatmul.msk.f32.gmra.mxu0 %vm49_vm0, %v36_v14  ;;  %1246 = vmatmul.msk.f32.gmra.mxu2 %vm49_vm0, %v1438_v4 }
  0x5a   :  { %1250 = vmatmul.msk.f32.gmra.mxu3 %vm49_vm0, %v1390_v0  ;;  %1242 = vmatmul.msk.f32.gmra.mxu1 %vm49_vm0, %v40_v8 }
  0x7a   :  { %v230_v20 = vpop.permute.xlu0 %229 }
  0x7b   :  { %vm277_vm1 = vcmp.eq.s32.totalorder %v230_v20, %v1332_v19 }
  0x7c   :  { %vm396_vm4 = vmxor %vm277_vm1, %vm1364_vm3 }
  0x7d   :  { %vm1567_vm5 = vmand %vm396_vm4, %vm295_vm2  ;;  %vm1189_vm4 = vcmp.eq.s32.totalorder %v1563_v21, 3 }
  0x7e   :  { %v1172_v63 = vsel %vm1567_vm5, 1.0, %v1365_v46 }
  0x7f   :  { %v1174_v2 = vrot.slane %v1172_v63, 7 }
  0x81   :  { %v1176_v8 = vsel %vm1133_vm13, %v1174_v2, 0.0 }
  0xbe   :  { %v1571_v23 = vpop.f32.mrf.mxu0 }
  0xbf   :  { %v476_v24 = vsel %vm1567_vm5, %v1571_v23, -1e+30  ;;  %vm346_vm6 = vcmp.lt.f32.partialorder %v1571_v23, 1.0  ;;  %v175_v25 = vpop.f32.mrf.mxu1  ;;  %v1158_v12 = vsel %vm1567_vm5, %v1571_v23, 0.0 }
  0xc0   :  { %492 = vmax.xlane.f32.xlu0 %v476_v24  ;;  %vm362_vm7 = vmand %vm277_vm1, %vm346_vm6  ;;  %v1160_v13 = vrot.slane %v1158_v12, 7  ;;  %vm1117_vm1 = vcmp.eq.s32.totalorder %v1563_v21, 0  ;;  %vm1197_vm6 = vcmp.eq.s32.totalorder %v1563_v21, 5 }
  0xc1   :  { %vm1577_vm8 = vmand %vm362_vm7, %vm295_vm2  ;;  %vm1120_vm2 = vcmp.eq.s32.totalorder %v1563_v21, 1 }
  0xc2   :  { %v428_v27 = vsel %vm1577_vm8, %v1571_v23, 1e+30  ;;  %v1144_v50 = vsel %vm1577_vm8, 1.0, %v1365_v46  ;;  %v1129_v53 = vsel %vm1577_vm8, %v1571_v23, 0.0  ;;  %v1162_v14 = vsel %vm1133_vm13, %v1160_v13, 0.0 }
  0xc3   :  { %444 = vmin.xlane.f32.xlu1 %v428_v27  ;;  %v1146_v52 = vrot.slane %v1144_v50, 7  ;;  %v1131_v54 = vrot.slane %v1129_v53, 7 }
  0xc4   :  { %v187_v28 = vpop.f32.mrf.mxu2 }
  0xc5   :  { %v199_v29 = vpop.f32.mrf.mxu3  ;;  %v1148_v55 = vsel %vm1133_vm13, %v1146_v52, 0.0  ;;  %v1134_v56 = vsel %vm1133_vm13, %v1131_v54, 0.0 }
  0xc6   :  { %v166_v30 = vpop.f32.mrf.mxu0 }
  0xc7   :  { %v178_v31 = vpop.f32.mrf.mxu1 }
  0xcc   :  { %v190_v32 = vpop.f32.mrf.mxu2 }
  0xcd   :  { %v202_v33 = vpop.f32.mrf.mxu3 }
  0xce   :  { %v169_v34 = vpop.f32.mrf.mxu0 }
  0xcf   :  { %v181_v35 = vpop.f32.mrf.mxu1 }
  0xd4   :  { %v193_v36 = vpop.f32.mrf.mxu2 }
  0xd5   :  { %v205_v37 = vpop.f32.mrf.mxu3 }
  0xd6   :  { %v172_v38 = vpop.f32.mrf.mxu0 }
  0xd7   :  { %v184_v39 = vpop.f32.mrf.mxu1 }
  0xdc   :  { %v196_v40 = vpop.f32.mrf.mxu2 }
  0xdd   :  { %v208_v41 = vpop.f32.mrf.mxu3 }
 0x133   :  { %v493_v42 = vpop.xlane.xlu0 %492 }
 0x134   :  { %v572_v43 = vadd.f32 0.1, %v493_v42 }
 0x136   :  { %vm588_vm9 = vcmp.lt.f32.partialorder %v1571_v23, %v572_v43  ;;  %v445_v44 = vpop.xlane.xlu1 %444 }
 0x137   :  { %v1251_v45 = vadd.f32 -0.1, %v445_v44  ;;  %vm604_vm10 = vmand %vm1577_vm8, %vm588_vm9 }
 0x138   :  { %v620_v47 = vsel %vm604_vm10, 1.0, %v1365_v46  ;;  %v716_v51 = vsel %vm604_vm10, %v1571_v23, 0.0 }
 0x139   :  { %636 = vadd.xlane.f32.xlu1 %v620_v47  ;;  %vm540_vm11 = vcmp.gt.f32.partialorder %v1571_v23, %v1251_v45 }
 0x13a   :  { %vm556_vm12 = vmand %vm1567_vm5, %vm540_vm11  ;;  %vm1193_vm5 = vcmp.eq.s32.totalorder %v1563_v21, 4 }
 0x13b   :  { %v668_v48 = vsel %vm556_vm12, 1.0, %v1365_v46  ;;  %v764_v49 = vsel %vm556_vm12, %v1571_v23, 0.0 }
 0x13c   :  { %684 = vadd.xlane.f32.xlu2 %v668_v48 }
 0x141   :  { %780 = vadd.xlane.f32.xlu1 %v764_v49 }
 0x144   :  { %732 = vadd.xlane.f32.xlu2 %v716_v51 }
 0x149   :  { %1149 = vadd.xlane.f32.xlu1 %v1148_v55 }
 0x14c   :  { %1135 = vadd.xlane.f32.xlu2 %v1134_v56 }
 0x1ac   :  { %v637_v57 = vpop.xlane.xlu1 %636 }
 0x1ad   :  { %v828_v58 = vmax.f32 %v637_v57, 1.0 }
 0x1af   :  { %v685_v59 = vpop.xlane.xlu2 %684  ;;  %1333 = vrcp.f32 %v828_v58 }
 0x1b0   :  { %vm812_vm14 = vcmp.ge.f32.partialorder %v685_v59, 1.0  ;;  %v860_v60 = vmax.f32 %v685_v59, 1.0 }
 0x1b1   :  { %vm988_vm0 = vmxor %vm812_vm14, %vm1364_vm3  ;;  %vm1186_vm3 = vcmp.eq.s32.totalorder %v1563_v21, 2 }
 0x1b2   :  { %1335 = vrcp.f32 %v860_v60  ;;  %v1020_v61 = vsel %vm988_vm0, 1.0, %v1365_v46 }
 0x1b3   :  { %v1077_v62 = vsel %vm1036_vm15, %v1020_v61, 0.0 }
 0x1b4   :  { %1108 = vadd.xlane.f32.xlu1 %v1077_v62  ;;  %v781_v4 = vpop.xlane.xlu1 %780 }
 0x1b5   :  { %v1334_v0 = vpop.eup %1333 }
 0x1b7   :  { %v733_v1 = vpop.xlane.xlu2 %732 }
 0x1b8   :  { %v1336_v3 = vpop.eup %1335  ;;  %v892_v5 = vmul.f32 %v1334_v0, %v733_v1 }
 0x1b9   :  { %v924_v6 = vmul.f32 %v1336_v3, %v781_v4 }
 0x1ba   :  { %v908_v7 = vsub.f32 1.0, %v892_v5 }
 0x1bc   :  { %v940_v9 = vadd.f32 %v924_v6, %v908_v7  ;;  %1177 = vadd.xlane.f32.xlu1 %v1176_v8  ;;  %v1150_v15 = vpop.xlane.xlu1 %1149 }
 0x1bd   :  { %v1151_v20 = vrot.slane %v1150_v15, 4 }
 0x1be   :  { %v972_v10 = vsel %vm812_vm14, %v940_v9, 0.0 }
 0x1bf   :  { %v1037_v11 = vsel %vm1036_vm15, %v972_v10, 0.0  ;;  %v1136_v17 = vpop.xlane.xlu2 %1135  ;;  %v1152_v27 = vadd.f32 %v1151_v20, %v1150_v15 }
 0x1c0   :  { %1068 = vadd.xlane.f32.xlu2 %v1037_v11  ;;  %v1137_v19 = vrot.slane %v1136_v17, 4 }
 0x1c1   :  { %v1153_v23 = vrot.slane %v1152_v27, 2 }
 0x1c2   :  { %v1138_v25 = vadd.f32 %v1137_v19, %v1136_v17 }
 0x1c3   :  { %v1154_v37 = vadd.f32 %v1153_v23, %v1152_v27 }
 0x1c4   :  { %v1139_v31 = vrot.slane %v1138_v25, 2 }
 0x1c5   :  { %v1155_v45 = vrot.slane %v1154_v37, 1 }
 0x1c6   :  { %v1140_v36 = vadd.f32 %v1139_v31, %v1138_v25 }
 0x1c7   :  { %v1156_v52 = vadd.f32 %v1155_v45, %v1154_v37 }
 0x1c8   :  { %1163 = vadd.xlane.f32.xlu2 %v1162_v14  ;;  %v1141_v44 = vrot.slane %v1140_v36, 1 }
 0x1ca   :  { %v1142_v51 = vadd.f32 %v1141_v44, %v1140_v36 }
 0x227   :  { %v1109_v16 = vpop.xlane.xlu1 %1108 }
 0x228   :  { %v1110_v18 = vrot.slane %v1109_v16, 4 }
 0x22a   :  { %v1111_v24 = vadd.f32 %v1110_v18, %v1109_v16 }
 0x22c   :  { %v1112_v28 = vrot.slane %v1111_v24, 2 }
 0x22e   :  { %v1113_v34 = vadd.f32 %v1112_v28, %v1111_v24 }
 0x22f   :  { %v1178_v26 = vpop.xlane.xlu1 %1177 }
 0x230   :  { %v1179_v29 = vrot.slane %v1178_v26, 4  ;;  %v1114_v41 = vrot.slane %v1113_v34, 1 }
 0x232   :  { %v1180_v33 = vadd.f32 %v1179_v29, %v1178_v26  ;;  %v1115_v49 = vadd.f32 %v1114_v41, %v1113_v34 }
 0x233   :  { %v1069_v30 = vpop.xlane.xlu2 %1068 }
 0x234   :  { %v1070_v22 = vrot.slane %v1069_v30, 4  ;;  %v1181_v39 = vrot.slane %v1180_v33, 2 }
 0x236   :  { %v1071_v32 = vadd.f32 %v1070_v22, %v1069_v30  ;;  %v1182_v48 = vadd.f32 %v1181_v39, %v1180_v33 }
 0x238   :  { %v1072_v35 = vrot.slane %v1071_v32, 2  ;;  %v1183_v54 = vrot.slane %v1182_v48, 1 }
 0x23a   :  { %v1073_v38 = vadd.f32 %v1072_v35, %v1071_v32  ;;  %v1184_v57 = vadd.f32 %v1183_v54, %v1182_v48 }
 0x23b   :  { %v1164_v40 = vpop.xlane.xlu2 %1163 }
 0x23c   :  { %v1165_v42 = vrot.slane %v1164_v40, 4  ;;  %v1074_v43 = vrot.slane %v1073_v38, 1 }
 0x23e   :  { %v1166_v46 = vadd.f32 %v1165_v42, %v1164_v40  ;;  %v1075_v47 = vadd.f32 %v1074_v43, %v1073_v38 }
 0x240   :  { %v1167_v50 = vrot.slane %v1166_v46, 2  ;;  %1315 = vpush %v1075_v47 }
 0x241   :  { %1317 = vpush %v1115_v49 }
 0x242   :  { %v1168_v53 = vadd.f32 %v1167_v50, %v1166_v46  ;;  %1319 = vpush %v1142_v51 }
 0x243   :  { %1321 = vpush %v1156_v52 }
 0x244   :  { %v1169_v55 = vrot.slane %v1168_v53, 1 }
 0x246   :  { %v1170_v56 = vadd.f32 %v1169_v55, %v1168_v53 }
 0x248   :  { %1323 = vpush %v1170_v56 }
 0x249   :  { %1325 = vpush %v1184_v57 }
 0x271   :  { %s1316_s2 = spop %1315 }
 0x272   :  { %v1118_v58 = vstv %s1316_s2  ;;  %s1318_s19 = spop %1317 }
 0x273   :  { %v1119_v59 = vsel %vm1117_vm1, %v1118_v58, 0.0  ;;  %v1121_v60 = vstv %s1318_s19  ;;  %s1320_s20 = spop %1319 }
 0x274   :  { %v1122_v61 = vsel %vm1120_vm2, %v1121_v60, 0.0  ;;  %v1187_v62 = vstv %s1320_s20  ;;  %s1322_s21 = spop %1321 }
 0x275   :  { %v1123_v63 = vadd.f32 %v1122_v61, %v1119_v59  ;;  %v1190_v0 = vstv %s1322_s21  ;;  %v1188_v1 = vsel %vm1186_vm3, %v1187_v62, 0.0 }
 0x276   :  { %v1191_v2 = vsel %vm1189_vm4, %v1190_v0, 0.0 }
 0x277   :  { %1124 = vst [vmem:[#allocation2] sm:$0x1] %v1123_v63  ;;  %v1192_v3 = vadd.f32 %v1191_v2, %v1188_v1 }
 0x279   :  { %s1324_s22 = spop %1323 }
 0x27a   :  { %v1194_v4 = vstv %s1324_s22  ;;  %s1326_s23 = spop %1325 }
 0x27b   :  { %v1195_v5 = vsel %vm1193_vm5, %v1194_v4, 0.0  ;;  %v1198_v6 = vstv %s1326_s23 }
 0x27c   :  { %v1196_v7 = vadd.f32 %v1195_v5, %v1192_v3  ;;  %v1199_v8 = vsel %vm1197_vm6, %v1198_v6, 0.0 }
 0x27e   :  { %v1200_v9 = vadd.f32 %v1199_v8, %v1196_v7 }
 0x280   :  { %v1201_v10 = vadd.f32 %v1200_v9, %v1123_v63 }
 0x282   :  { %1202 = vst [vmem:[#allocation2] sm:$0x1] %v1201_v10 }
 0x283   :  { %1213 = dma.vmem_to_hbm [thread:$0]  %s1209_s25, 16, %s1211_s28, [#allocation3]  }
 0x284   :  { %1361 = dma.done.wait [#allocation3], 16  }
 0x285   :  { %1362 = vsyncadd [#allocation3], 4294967280 }
 0x286   :  { %1218 = vsyncpa [#allocation3], 1 }

</bundles_post_ra>
